<compile_context>
chip_gen: v7x
topology: tpu7x:2x2x1
jax: 0.10.0
libtpu: 0.0.40
codegen_flags: <defaults>
</compile_context>

<pallas_src>
import functools

import jax
import jax.numpy as jnp
from jax import lax
from jax.experimental import pallas as pl
from jax.experimental.pallas import tpu as pltpu


def _round_up(x, m):
    return ((x + m - 1) // m) * m


def _vmem_budgets():
    """Generation-aware (per-block budget, scoped-vmem limit) in bytes."""
    try:
        cap = int(pltpu.get_tpu_info().vmem_capacity_bytes)
    except Exception:
        cap = 64 * 1024 * 1024                      # conservative (v7x-sized) fallback
    block_budget = min(16 * 1024 * 1024, cap // 8)  # 16 MiB on v5e/v6e, 8 MiB on v7x
    vmem_limit = min((cap * 3) // 4, 96 * 1024 * 1024)  # 96 MiB v5e/v6e, 48 MiB v7x
    return block_budget, int(vmem_limit)


def _largest_valid_n_tile(n, cap_rows):
    """n_tile must equal the full batch or be a multiple of 8 (sublane rule)."""
    cap_rows = int(cap_rows)
    if cap_rows >= n:
        return n
    return (cap_rows // 8) * 8   # may be 0 -> caller picks another strategy


# ---------------------------------------------------------------------------
# Kernels
# ---------------------------------------------------------------------------

def _se_kernel_single(x_ref, w1t_ref, b1_ref, w2t_ref, b2_ref, o_ref):
    # x_ref: (n_tile, C, HW) native dtype; whole spatial extent in one block.
    x = x_ref[...].astype(jnp.float32)
    s = jnp.sum(x, axis=-1)                                   # (n_tile, C); 1/HW in w1t
    h = jnp.dot(s, w1t_ref[...], preferred_element_type=jnp.float32)
    h = jnp.maximum(h + b1_ref[...], 0.0)
    y = jnp.dot(h, w2t_ref[...], preferred_element_type=jnp.float32)
    o_ref[...] = jax.nn.sigmoid(y + b2_ref[...]).astype(o_ref.dtype)


def _se_kernel_multi(x_ref, w1t_ref, b1_ref, w2t_ref, b2_ref, o_ref, acc_ref,
                     *, true_hw, needs_mask):
    # x_ref  : (n_tile, C, hw_tile) native dtype
    # acc_ref: (n_tile, C) f32 scratch, persistent across the HW grid axis
    s = pl.program_id(1)
    hw_tile = x_ref.shape[-1]

    @pl.when(s == 0)
    def _init():
        acc_ref[...] = jnp.zeros_like(acc_ref)

    x = x_ref[...].astype(jnp.float32)
    if needs_mask:
        # Mask the ragged tail of the last spatial tile (garbage lanes -> 0).
        lane = lax.broadcasted_iota(jnp.int32, x.shape, 2)
        x = jnp.where(s * hw_tile + lane < true_hw, x, 0.0)
    acc_ref[...] += jnp.sum(x, axis=-1)                       # (n_tile, C)

    @pl.when(s == pl.num_programs(1) - 1)
    def _finalize():
        sacc = acc_ref[...]                                   # spatial sum; 1/HW in w1t
        h = jnp.dot(sacc, w1t_ref[...], preferred_element_type=jnp.float32)
        h = jnp.maximum(h + b1_ref[...], 0.0)
        y = jnp.dot(h, w2t_ref[...], preferred_element_type=jnp.float32)
        o_ref[...] = jax.nn.sigmoid(y + b2_ref[...]).astype(o_ref.dtype)


# ---------------------------------------------------------------------------
# Wrapper
# ---------------------------------------------------------------------------

def se_conv_block(x_nchw, w1, b1, w2, b2, *, block_budget_bytes=None):
    """x: (N,C,H,W); w1: (Cm,C,1,1); b1: (Cm,); w2: (C,Cm,1,1); b2: (C,).

    Returns the SE gate (N, C, 1, 1) in float32, matching the PyTorch module.
    """
    N, C, H, W = x_nchw.shape
    Cm = w1.shape[0]
    HW = H * W
    itemsize = jnp.dtype(x_nchw.dtype).itemsize

    block_budget, vmem_limit = _vmem_budgets()
    if block_budget_bytes is not None:
        block_budget = int(block_budget_bytes)

    # Native dtype, no padding, no copy (contiguous reshape).
    x_flat = x_nchw.reshape(N, C, HW)

    # Pre-transpose 1x1-conv weights; fold 1/(H*W) into conv1 weight so the
    # kernel only accumulates plain sums.
    w1t = (jnp.transpose(w1.reshape(Cm, C)) / float(HW)).astype(jnp.float32)  # (C, Cm)
    w2t = jnp.transpose(w2.reshape(C, Cm)).astype(jnp.float32)                # (Cm, C)
    b1_2d = b1.reshape(1, Cm).astype(jnp.float32)
    b2_2d = b2.reshape(1, C).astype(jnp.float32)

    cost = pl.CostEstimate(
        flops=4 * N * C * Cm + N * C * HW,
        transcendentals=N * C,
        bytes_accessed=(N * C * HW * itemsize            # x read (no padding now)
                        + N * C * 4                      # gate write
                        + (2 * C * Cm + Cm + C) * 4),    # weights/biases
    )

    hw128 = _round_up(HW, 128)
    row_bytes = C * hw128 * itemsize                     # one batch row, full spatial

    weight_specs = lambda nargs: [                       # broadcast (tiny) operands
        pl.BlockSpec((C, Cm), (lambda *a: (0, 0))),
        pl.BlockSpec((1, Cm), (lambda *a: (0, 0))),
        pl.BlockSpec((Cm, C), (lambda *a: (0, 0))),
        pl.BlockSpec((1, C), (lambda *a: (0, 0))),
    ]

    # ---------------- fast path: whole spatial extent as ONE tile ----------
    single_tile = row_bytes <= block_budget
    n_tile = 0
    if single_tile:
        n_tile = _largest_valid_n_tile(N, max(1, block_budget // row_bytes))
        single_tile = n_tile > 0

    if single_tile:
        # Prefer >= 2 batch programs when it is legal (keeps both v7x TCs busy;
        # near-free on v5e/v6e since blocks stay multi-MiB).
        if n_tile == N and N >= 2:
            half = _largest_valid_n_tile(N, -(-N // 2))
            if half >= 8:
                n_tile = half
        grid = (pl.cdiv(N, n_tile),)

        out = pl.pallas_call(
            _se_kernel_single,
            out_shape=jax.ShapeDtypeStruct((N, C), jnp.float32),
            grid_spec=pltpu.PrefetchScalarGridSpec(
                num_scalar_prefetch=0,
                grid=grid,
                in_specs=[pl.BlockSpec((n_tile, C, HW), lambda n: (n, 0, 0))]
                         + weight_specs(1),
                out_specs=pl.BlockSpec((n_tile, C), lambda n: (n, 0)),
            ),
            compiler_params=pltpu.CompilerParams(
                dimension_semantics=("parallel",),
                vmem_limit_bytes=vmem_limit,
            ),
            cost_estimate=cost,
        )(x_flat, w1t, b1_2d, w2t, b2_2d)
        return out.reshape(N, C, 1, 1)

    # ---------------- slow path: tile the spatial reduction ----------------
    n_tile = N if N <= 8 else 8
    # Largest 128-multiple hw_tile fitting the budget, then spread evenly over
    # the minimum number of reduction steps (waste per step < 128 lanes).
    max_tile = max(128, (block_budget // max(1, n_tile * C * itemsize)) // 128 * 128)
    max_tile = min(max_tile, hw128)
    k = pl.cdiv(hw128, max_tile)
    hw_tile = pl.cdiv(hw128 // 128, k) * 128
    hw_steps = pl.cdiv(HW, hw_tile)
    needs_mask = (HW % hw_tile) != 0

    kernel = functools.partial(_se_kernel_multi, true_hw=HW, needs_mask=needs_mask)
    grid = (pl.cdiv(N, n_tile), hw_steps)

    # TODO(synk): for N == 1 on v7x, split the HW reduction across the two
    # TensorCores (per-core partial sums + tiny combine) so a core is not idle.
    out = pl.pallas_call(
        kernel,
        out_shape=jax.ShapeDtypeStruct((N, C), jnp.float32),
        grid_spec=pltpu.PrefetchScalarGridSpec(
            num_scalar_prefetch=0,
            grid=grid,
            in_specs=[pl.BlockSpec((n_tile, C, hw_tile), lambda n, s: (n, 0, s))]
                     + weight_specs(2),
            out_specs=pl.BlockSpec((n_tile, C), lambda n, s: (n, 0)),
            scratch_shapes=[pltpu.VMEM((n_tile, C), jnp.float32)],
        ),
        compiler_params=pltpu.CompilerParams(
            dimension_semantics=("parallel", "arbitrary"),
            vmem_limit_bytes=vmem_limit,
        ),
        cost_estimate=cost,
    )(x_flat, w1t, b1_2d, w2t, b2_2d)
    return out.reshape(N, C, 1, 1)


# ---------------------------------------------------------------------------
# Reference + tests
# ---------------------------------------------------------------------------

def _reference(x_nchw, w1, b1, w2, b2):
    N, C, H, W = x_nchw.shape
    Cm = w1.shape[0]
    s = jnp.mean(x_nchw.astype(jnp.float32), axis=(2, 3))          # (N, C)
    h = jnp.maximum(s @ w1.reshape(Cm, C).T.astype(jnp.float32) + b1, 0.0)
    y = jax.nn.sigmoid(h @ w2.reshape(C, Cm).T.astype(jnp.float32) + b2)
    return y.reshape(N, C, 1, 1)


def _make_inputs(key, n, c, h, w, r, dtype):
    cm = c // r
    kx, k1, k2, k3, k4, key = jax.random.split(key, 6)
    x = jax.random.normal(kx, (n, c, h, w), dtype=jnp.float32).astype(dtype)
    w1 = 0.1 * jax.random.normal(k1, (cm, c, 1, 1), dtype=jnp.float32)
    b1 = 0.05 * jax.random.normal(k2, (cm,), dtype=jnp.float32)
    w2 = 0.1 * jax.random.normal(k3, (c, cm, 1, 1), dtype=jnp.float32)
    b2 = 0.05 * jax.random.normal(k4, (c,), dtype=jnp.float32)
    return key, (x, w1, b1, w2, b2)


if __name__ == "__main__":
    key = jax.random.PRNGKey(0)

    # Test 1: f32, aligned-ish: N=2, C=64, H=W=8, r=16 (single-tile fast path).
    key, (x, w1, b1, w2, b2) = _make_inputs(key, 2, 64, 8, 8, 16, jnp.float32)
    out = jax.block_until_ready(se_conv_block(x, w1, b1, w2, b2))
    ref = _reference(x, w1, b1, w2, b2)
    assert out.shape == (2, 64, 1, 1), out.shape
    assert jnp.allclose(out, ref, atol=1e-5, rtol=1e-5), float(jnp.max(jnp.abs(out - ref)))

    # Test 2: bf16 input, ragged spatial (HW=100, not a multiple of 128),
    # exercises native-dtype read + full-extent (non-128) lane block.
    key, (x2, w1_2, b1_2, w2_2, b2_2) = _make_inputs(key, 3, 32, 10, 10, 8, jnp.bfloat16)
    out2 = jax.block_until_ready(se_conv_block(x2, w1_2, b1_2, w2_2, b2_2))
    ref2 = _reference(x2, w1_2, b1_2, w2_2, b2_2)
    assert out2.shape == (3, 32, 1, 1), out2.shape
    assert jnp.allclose(out2, ref2, atol=1e-2, rtol=1e-2), float(jnp.max(jnp.abs(out2 - ref2)))

    # Test 3: force the multi-tile (reduction-axis + in-kernel masking) path
    # with a tiny block budget; HW=130 so the last tile has only 2 valid lanes.
    key, (x3, w1_3, b1_3, w2_3, b2_3) = _make_inputs(key, 2, 128, 13, 10, 16, jnp.float32)
    out3 = jax.block_until_ready(
        se_conv_block(x3, w1_3, b1_3, w2_3, b2_3, block_budget_bytes=64 * 1024))
    ref3 = _reference(x3, w1_3, b1_3, w2_3, b2_3)
    assert out3.shape == (2, 128, 1, 1), out3.shape
    assert jnp.allclose(out3, ref3, atol=1e-5, rtol=1e-5), float(jnp.max(jnp.abs(out3 - ref3)))

    print("KERNEL_OK")
</pallas_src>

<mosaic_0001>
module attributes {stable_mosaic.version = 11 : i64} {
  func.func @_se_kernel_single(%arg0: i32, %arg1: memref<2x64x64xf32, #tpu.memory_space<vmem>>, %arg2: memref<64x4xf32, #tpu.memory_space<vmem>>, %arg3: memref<1x4xf32, #tpu.memory_space<vmem>>, %arg4: memref<4x64xf32, #tpu.memory_space<vmem>>, %arg5: memref<1x64xf32, #tpu.memory_space<vmem>>, %arg6: memref<2x64xf32, #tpu.memory_space<vmem>>) attributes {dimension_semantics = [#tpu.dimension_semantics<parallel>], iteration_bounds = array<i64: 1>, scalar_prefetch = 0 : i64, scratch_operands = 0 : i64, tpu.core_type = #tpu.core_type<tc>, window_params = [{transform_indices = @transform_0, window_bounds = array<i64: 2, 64, 64>}, {pipeline_mode = #tpu.pipeline_mode<synchronous>, transform_indices = @transform_1, window_bounds = array<i64: 64, 4>}, {pipeline_mode = #tpu.pipeline_mode<synchronous>, transform_indices = @transform_2, window_bounds = array<i64: 1, 4>}, {pipeline_mode = #tpu.pipeline_mode<synchronous>, transform_indices = @transform_3, window_bounds = array<i64: 4, 64>}, {pipeline_mode = #tpu.pipeline_mode<synchronous>, transform_indices = @transform_4, window_bounds = array<i64: 1, 64>}, {transform_indices = @transform_5, window_bounds = array<i64: 2, 64>}]} {
    %c0 = arith.constant 0 : index
    %c0_0 = arith.constant 0 : index
    %c0_1 = arith.constant 0 : index
    %0 = vector.load %arg1[%c0, %c0_0, %c0_1] : memref<2x64x64xf32, #tpu.memory_space<vmem>>, vector<2x64x64xf32>
    %cst = arith.constant dense<0.000000e+00> : vector<2x64xf32>
    %1 = vector.multi_reduction <add>, %0, %cst [2] : vector<2x64x64xf32> to vector<2x64xf32>
    %c0_2 = arith.constant 0 : index
    %c0_3 = arith.constant 0 : index
    %2 = vector.load %arg2[%c0_2, %c0_3] : memref<64x4xf32, #tpu.memory_space<vmem>>, vector<64x4xf32>
    %cst_4 = arith.constant dense<0.000000e+00> : vector<2x4xf32>
    %3 = tpu.matmul %1, %2, %cst_4 {dimension_numbers = #tpu.dot_dimension_numbers<[1], [0], [0], [1], [0, 0, 1, 1], [], []>} : vector<2x64xf32>, vector<64x4xf32>, vector<2x4xf32> -> vector<2x4xf32>
    %c0_5 = arith.constant 0 : index
    %c0_6 = arith.constant 0 : index
    %4 = vector.load %arg3[%c0_5, %c0_6] : memref<1x4xf32, #tpu.memory_space<vmem>>, vector<1x4xf32>
    %5 = vector.broadcast %4 : vector<1x4xf32> to vector<2x4xf32>
    %6 = arith.addf %3, %5 : vector<2x4xf32>
    %cst_7 = arith.constant 0.000000e+00 : f32
    %7 = vector.broadcast %cst_7 : f32 to vector<2x4xf32>
    %8 = arith.maximumf %6, %7 : vector<2x4xf32>
    %c0_8 = arith.constant 0 : index
    %c0_9 = arith.constant 0 : index
    %9 = vector.load %arg4[%c0_8, %c0_9] : memref<4x64xf32, #tpu.memory_space<vmem>>, vector<4x64xf32>
    %cst_10 = arith.constant dense<0.000000e+00> : vector<2x64xf32>
    %10 = tpu.matmul %8, %9, %cst_10 {dimension_numbers = #tpu.dot_dimension_numbers<[1], [0], [0], [1], [0, 0, 1, 1], [], []>} : vector<2x4xf32>, vector<4x64xf32>, vector<2x64xf32> -> vector<2x64xf32>
    %c0_11 = arith.constant 0 : index
    %c0_12 = arith.constant 0 : index
    %11 = vector.load %arg5[%c0_11, %c0_12] : memref<1x64xf32, #tpu.memory_space<vmem>>, vector<1x64xf32>
    %12 = vector.broadcast %11 : vector<1x64xf32> to vector<2x64xf32>
    %13 = arith.addf %10, %12 : vector<2x64xf32>
    %14 = arith.negf %13 : vector<2x64xf32>
    %15 = math.exp %14 : vector<2x64xf32>
    %cst_13 = arith.constant 1.000000e+00 : f32
    %16 = vector.broadcast %cst_13 : f32 to vector<2x64xf32>
    %17 = arith.addf %16, %15 : vector<2x64xf32>
    %18 = arith.divf %16, %17 : vector<2x64xf32>
    %c0_14 = arith.constant 0 : index
    %c0_15 = arith.constant 0 : index
    %19 = vector.load %arg6[%c0_14, %c0_15] : memref<2x64xf32, #tpu.memory_space<vmem>>, vector<2x64xf32>
    tpu.vector_store %arg6[%c0_14, %c0_15], %18 {strides = array<i32>} : memref<2x64xf32, #tpu.memory_space<vmem>>, vector<2x64xf32>,
    return
  }
  func.func @transform_0(%arg0: i32) -> (i32, i32, i32) {
    %c0_i32 = arith.constant 0 : i32
    %c0_i32_0 = arith.constant 0 : i32
    %c0_i32_1 = arith.constant 0 : i32
    return %arg0, %c0_i32, %c0_i32_0 : i32, i32, i32
  }
  func.func @transform_1(%arg0: i32) -> (i32, i32) {
    %c0_i32 = arith.constant 0 : i32
    %c0_i32_0 = arith.constant 0 : i32
    %c0_i32_1 = arith.constant 0 : i32
    return %c0_i32, %c0_i32_0 : i32, i32
  }
  func.func @transform_2(%arg0: i32) -> (i32, i32) {
    %c0_i32 = arith.constant 0 : i32
    %c0_i32_0 = arith.constant 0 : i32
    %c0_i32_1 = arith.constant 0 : i32
    return %c0_i32, %c0_i32_0 : i32, i32
  }
  func.func @transform_3(%arg0: i32) -> (i32, i32) {
    %c0_i32 = arith.constant 0 : i32
    %c0_i32_0 = arith.constant 0 : i32
    %c0_i32_1 = arith.constant 0 : i32
    return %c0_i32, %c0_i32_0 : i32, i32
  }
  func.func @transform_4(%arg0: i32) -> (i32, i32) {
    %c0_i32 = arith.constant 0 : i32
    %c0_i32_0 = arith.constant 0 : i32
    %c0_i32_1 = arith.constant 0 : i32
    return %c0_i32, %c0_i32_0 : i32, i32
  }
  func.func @transform_5(%arg0: i32) -> (i32, i32) {
    %c0_i32 = arith.constant 0 : i32
    %c0_i32_0 = arith.constant 0 : i32
    return %arg0, %c0_i32 : i32, i32
  }
}

</mosaic_0001>

<bundles_post_ra>
// kernel: tpu_custom_call.1
= control target key start
LH: loop header
LB: loop body
LE: loop exit
PB: predicated region body
PF: predicated region fallthrough
CT: control target
= control target key end

     0   :  { %10 = vsyncpa [#allocation3], 0  ;;  %s642_s0 = inlined_call_operand.hbm [shape: f32[2,64,64], index: 0, kind: input, shape index: {}]   ;;  %s643_s1 = inlined_call_operand.vmem [shape: f32[64,4], index: 1, kind: input, shape index: {}]   ;;  %s644_s2 = inlined_call_operand.vmem [shape: f32[1,4], index: 2, kind: input, shape index: {}]   ;;  %s645_s3 = inlined_call_operand.vmem [shape: f32[4,64], index: 3, kind: input, shape index: {}]   ;;  %s646_s4 = inlined_call_operand.vmem [shape: f32[1,64], index: 4, kind: input, shape index: {}]   ;;  %s647_s5 = inlined_call_operand.hbm [shape: f32[2,64], index: 5, kind: output, shape index: {}]  }
   0x1   :  { %11 = vsyncpa [#allocation4], 0  ;;  %s521_s18 = smov [#allocation2]   ;;  %s473_s22 = scalar_lea.hbm %s642_s0, 2048 }
   0x2   :  { %s17_s19 = sshll.u32 %s521_s18, 4  ;;  %p474_p0 = scmp.ne.s32.totalorder %s642_s0, %s473_s22  ;;  %s18_s19 = int_to_ptr.vmem [resolvable:$true] %s17_s19 }
   0x3   :  { %p477_p1 = scmp.lt.u32.totalorder %s473_s22, %s642_s0 }
   0x5   :  { %p479_p2 = pnand %p477_p1, %p474_p0 }
   0x7   :  { %482 = shalt.err (!%p479_p2)
}
   0x8   :  { %s483_s27 = scalar_lea.vmem %s18_s19, 2048  ;;  %p488_p4 = scmp.lt.s32.totalorder %s18_s19, %s18_s19 }
   0x9   :  { %p484_p3 = scmp.ne.s32.totalorder %s18_s19, %s483_s27  ;;  %p489_p5 = scmp.lt.s32.totalorder %s483_s27, %s483_s27 }
   0xb   :  { %p490_p6 = por %p489_p5, %p488_p4 }
   0xd   :  { %p491_p7 = pnand %p490_p6, %p484_p3 }
   0xf   :  { %494 = shalt.err (!%p491_p7)
}
  0x10   :  { %s522_s28 = smov 128   ;;  %s523_s29 = smov 8  }
  0x11   :  { %23 = dma.hbm_to_vmem [thread:$0]  %s642_s0, 2048, %s18_s19, [#allocation3], %s522_s28, %s522_s28, %s523_s29  }
  0x12   :  { %517 = dma.done.wait [#allocation3], 2048  }
  0x13   :  { %518 = vsyncadd [#allocation3], 4294965248  ;;  %vm51_vm0 = vcmask 523264   ;;  %v43_v0 = vld [vmem:[#allocation2 + $0x40] sm:$0xff]  ;;  %v44_v2 = vld [vmem:[#allocation2 + $0x48] sm:$0xff]  ;;  %v524_v35 = vmov 0.0|0.0   ;;  %v131_v50 = vlaneseq }
  0x14   :  { %v35_v1 = vld [vmem:[#allocation2] sm:$0xff]  ;;  %v76_v3 = vsel %vm51_vm0, %v43_v0, 0.0  ;;  %v36_v5 = vld [vmem:[#allocation2 + $0x8] sm:$0xff]  ;;  %v79_v6 = vsel %vm51_vm0, %v44_v2, 0.0  ;;  %v45_v8 = vld [vmem:[#allocation2 + $0x50] sm:$0xff]  ;;  %450 = vmatprep.subr.bf16.mxu0 %v524_v35  ;;  %vm525_vm1 = vmmov 0  }
  0x15   :  { %v52_v4 = vsel %vm51_vm0, %v35_v1, 0.0  ;;  %77 = vadd.xlane.f32.xlu1 %v76_v3  ;;  %v55_v7 = vsel %vm51_vm0, %v36_v5, 0.0  ;;  %v37_v9 = vld [vmem:[#allocation2 + $0x10] sm:$0xff]  ;;  %v82_v10 = vsel %vm51_vm0, %v45_v8, 0.0  ;;  %v46_v12 = vld [vmem:[#allocation2 + $0x58] sm:$0xff]  ;;  %v47_v16 = vld [vmem:[#allocation2 + $0x60] sm:$0xff] }
  0x16   :  { %53 = vadd.xlane.f32.xlu0 %v52_v4  ;;  %v58_v11 = vsel %vm51_vm0, %v37_v9, 0.0  ;;  %v38_v13 = vld [vmem:[#allocation2 + $0x18] sm:$0xff]  ;;  %v85_v14 = vsel %vm51_vm0, %v46_v12, 0.0  ;;  %v39_v17 = vld [vmem:[#allocation2 + $0x20] sm:$0xff]  ;;  %v88_v18 = vsel %vm51_vm0, %v47_v16, 0.0  ;;  %v48_v20 = vld [vmem:[#allocation2 + $0x68] sm:$0xff] }
  0x17   :  { %v61_v15 = vsel %vm51_vm0, %v38_v13, 0.0  ;;  %v64_v19 = vsel %vm51_vm0, %v39_v17, 0.0  ;;  %v40_v21 = vld [vmem:[#allocation2 + $0x28] sm:$0xff]  ;;  %v91_v22 = vsel %vm51_vm0, %v48_v20, 0.0  ;;  %v49_v24 = vld [vmem:[#allocation2 + $0x70] sm:$0xff]  ;;  %v50_v28 = vld [vmem:[#allocation2 + $0x78] sm:$0xff] }
  0x18   :  { %v67_v23 = vsel %vm51_vm0, %v40_v21, 0.0  ;;  %v41_v25 = vld [vmem:[#allocation2 + $0x30] sm:$0xff]  ;;  %v94_v26 = vsel %vm51_vm0, %v49_v24, 0.0  ;;  %v42_v29 = vld [vmem:[#allocation2 + $0x38] sm:$0xff]  ;;  %v97_v30 = vsel %vm51_vm0, %v50_v28, 0.0  ;;  %v100_v32 = vld [vmem:[%s643_s1] sm:$0xff] }
  0x19   :  { %80 = vadd.xlane.f32.xlu1 %v79_v6  ;;  %v70_v27 = vsel %vm51_vm0, %v41_v25, 0.0  ;;  %v73_v31 = vsel %vm51_vm0, %v42_v29, 0.0  ;;  %v101_v33 = vld [vmem:[%s643_s1 + $0x8] sm:$0xff]  ;;  %v102_v36 = vld [vmem:[%s643_s1 + $0x10] sm:$0xff]  ;;  %v103_v37 = vld [vmem:[%s643_s1 + $0x18] sm:$0xff]  ;;  %v526_v45 = vmov 0.0  }
  0x1a   :  { %56 = vadd.xlane.f32.xlu0 %v55_v7  ;;  %v451_v34 = vpack.c.bf16 %v101_v33, %v100_v32  ;;  %v454_v38 = vpack.c.bf16 %v103_v37, %v102_v36  ;;  %v104_v39 = vld [vmem:[%s643_s1 + $0x20] sm:$0xff]  ;;  %v105_v40 = vld [vmem:[%s643_s1 + $0x28] sm:$0xff]  ;;  %v106_v42 = vld [vmem:[%s643_s1 + $0x30] sm:$0xff]  ;;  %442 = vmatprep.mubr.msk.f32.mxu0 %vm525_vm1, %v526_v45  ;;  %v132_v53 = vand.u32 127, %v131_v50  ;;  %v134_v58 = vshrl.u32 %v131_v50, 7 }
  0x1b   :  { %v457_v41 = vpack.c.bf16 %v105_v40, %v104_v39  ;;  %v107_v43 = vld [vmem:[%s643_s1 + $0x38] sm:$0xff]  ;;  %445 = vmatprep.subr.mxu1 %v526_v45  ;;  %447 = vmatprep.mubr.msk.f32.mxu1 %vm525_vm1, %v526_v45  ;;  %vm142_vm2 = vcmask 130112   ;;  %vm149_vm3 = vcmask 195712   ;;  %vm156_vm4 = vcmask 261312  }
  0x1c   :  { %452 = vmatpush3.bf16.msra.mxu0 %v451_v34  ;;  %v460_v44 = vpack.c.bf16 %v107_v43, %v106_v42  ;;  %v137_v56 = vadd.s32 4294967288, %v132_v53  ;;  %v144_v57 = vadd.s32 4294967280, %v132_v53  ;;  %v151_v59 = vadd.s32 4294967272, %v132_v53 }
  0x1d   :  { %83 = vadd.xlane.f32.xlu1 %v82_v10  ;;  %453 = vmatprep.subr.bf16.mxu0 %v524_v35  ;;  %v158_v60 = vadd.s32 4294967264, %v132_v53  ;;  %v165_v0 = vadd.s32 4294967256, %v132_v53  ;;  %v172_v2 = vadd.s32 4294967248, %v132_v53  ;;  %v135_v3 = vsub.s32 %v132_v53, %v134_v58 }
  0x1e   :  { %59 = vadd.xlane.f32.xlu0 %v58_v11  ;;  %v140_v63 = vsub.s32 %v137_v56, %v134_v58  ;;  %v147_v1 = vsub.s32 %v144_v57, %v134_v58  ;;  %v154_v4 = vsub.s32 %v151_v59, %v134_v58  ;;  %v179_v8 = vadd.s32 4294967240, %v132_v53  ;;  %v411_v53 = vld [vmem:[%s646_s4] ss:$0 sm:$0xff] }
  0x1f   :  { %v161_v5 = vsub.s32 %v158_v60, %v134_v58  ;;  %v168_v11 = vsub.s32 %v165_v0, %v134_v58  ;;  %vm163_vm5 = vcmask 326912   ;;  %vm170_vm6 = vcmask 392512  }
  0x20   :  { %455 = vmatpush3.bf16.msra.mxu0 %v454_v38  ;;  %vm177_vm7 = vcmask 458112   ;;  %vm184_vm8 = vcmask 523712   ;;  %vm225_vm9 = vcmask 1041409   ;;  %vm312_vm10 = vcmask 1043456  }
  0x21   :  { %86 = vadd.xlane.f32.xlu1 %v85_v14  ;;  %456 = vmatprep.subr.bf16.mxu0 %v524_v35  ;;  %v175_v14 = vsub.s32 %v172_v2, %v134_v58  ;;  %vm308_vm11 = vcmask 31744   ;;  %vm392_vm12 = vcmask 517120  }
  0x22   :  { %62 = vadd.xlane.f32.xlu0 %v61_v15 }
  0x24   :  { %458 = vmatpush3.bf16.msra.mxu0 %v457_v41 }
  0x25   :  { %89 = vadd.xlane.f32.xlu1 %v88_v18  ;;  %459 = vmatprep.subr.bf16.mxu0 %v524_v35 }
  0x26   :  { %65 = vadd.xlane.f32.xlu0 %v64_v19 }
  0x28   :  { %461 = vmatpush3.bf16.msra.mxu0 %v460_v44 }
  0x29   :  { %92 = vadd.xlane.f32.xlu1 %v91_v22 }
  0x2a   :  { %68 = vadd.xlane.f32.xlu0 %v67_v23  ;;  %v182_v23 = vsub.s32 %v179_v8, %v134_v58 }
  0x2d   :  { %95 = vadd.xlane.f32.xlu1 %v94_v26 }
  0x2e   :  { %71 = vadd.xlane.f32.xlu0 %v70_v27 }
  0x31   :  { %98 = vadd.xlane.f32.xlu1 %v97_v30 }
  0x32   :  { %74 = vadd.xlane.f32.xlu0 %v73_v31 }
  0xa2   :  { %v78_v46 = vpop.xlane.xlu1 %77 }
  0xa3   :  { %v54_v47 = vpop.xlane.xlu0 %53  ;;  %v189_v15 = vrot.slane %v78_v46, %v135_v3 }
  0xa4   :  { %v136_v16 = vrot.slane %v54_v47, %v135_v3  ;;  %v300_v47 = vld [vmem:[%s645_s3] sm:$0xf]  ;;  %s527_s3 = smov [#allocation5]  }
  0xa5   :  { %446 = vmatpush3.msk.msra.mxu1 %vm312_vm10, %v300_v47 }
  0xa6   :  { %v81_v48 = vpop.xlane.xlu1 %80 }
  0xa7   :  { %v57_v49 = vpop.xlane.xlu0 %56  ;;  %v193_v9 = vrot.slane %v81_v48, %v140_v63  ;;  %v409_v48 = vld [vmem:[%s644_s2] ss:$0 sm:$0xff]  ;;  %s400_s2 = sshll.u32 %s527_s3, 4  ;;  %s401_s2 = int_to_ptr.vmem [resolvable:$true] %s400_s2 }
  0xa8   :  { %v141_v10 = vrot.slane %v57_v49, %v140_v63  ;;  %s495_s27 = scalar_lea.vmem %s401_s2, 32  ;;  %p500_p9 = scmp.lt.s32.totalorder %s401_s2, %s401_s2 }
  0xa9   :  { %v194_v24 = vsel %vm142_vm2, %v193_v9, %v189_v15  ;;  %p496_p8 = scmp.ne.s32.totalorder %s401_s2, %s495_s27  ;;  %p501_p10 = scmp.lt.s32.totalorder %s495_s27, %s495_s27 }
  0xaa   :  { %v84_v51 = vpop.xlane.xlu1 %83  ;;  %v143_v25 = vsel %vm142_vm2, %v141_v10, %v136_v16 }
  0xab   :  { %v60_v52 = vpop.xlane.xlu0 %59  ;;  %v198_v12 = vrot.slane %v84_v51, %v147_v1  ;;  %p502_p11 = por %p501_p10, %p500_p9 }
  0xac   :  { %v148_v13 = vrot.slane %v60_v52, %v147_v1 }
  0xad   :  { %v199_v28 = vsel %vm149_vm3, %v198_v12, %v194_v24  ;;  %p503_p12 = pnand %p502_p11, %p496_p8 }
  0xae   :  { %v87_v54 = vpop.xlane.xlu1 %86  ;;  %v150_v29 = vsel %vm149_vm3, %v148_v13, %v143_v25 }
  0xaf   :  { %v63_v55 = vpop.xlane.xlu0 %62  ;;  %v203_v17 = vrot.slane %v87_v54, %v154_v4 }
  0xb0   :  { %v155_v18 = vrot.slane %v63_v55, %v154_v4 }
  0xb1   :  { %v204_v32 = vsel %vm156_vm4, %v203_v17, %v199_v28 }
  0xb2   :  { %v90_v61 = vpop.xlane.xlu1 %89  ;;  %v157_v33 = vsel %vm156_vm4, %v155_v18, %v150_v29 }
  0xb3   :  { %v66_v62 = vpop.xlane.xlu0 %65  ;;  %v208_v19 = vrot.slane %v90_v61, %v161_v5 }
  0xb4   :  { %v162_v20 = vrot.slane %v66_v62, %v161_v5 }
  0xb5   :  { %v209_v34 = vsel %vm163_vm5, %v208_v19, %v204_v32 }
  0xb6   :  { %v93_v6 = vpop.xlane.xlu1 %92  ;;  %v164_v35 = vsel %vm163_vm5, %v162_v20, %v157_v33 }
  0xb7   :  { %v69_v7 = vpop.xlane.xlu0 %68  ;;  %v213_v26 = vrot.slane %v93_v6, %v168_v11 }
  0xb8   :  { %v169_v27 = vrot.slane %v69_v7, %v168_v11 }
  0xb9   :  { %v214_v38 = vsel %vm170_vm6, %v213_v26, %v209_v34 }
  0xba   :  { %v96_v21 = vpop.xlane.xlu1 %95  ;;  %v171_v39 = vsel %vm170_vm6, %v169_v27, %v164_v35 }
  0xbb   :  { %v72_v22 = vpop.xlane.xlu0 %71  ;;  %v218_v30 = vrot.slane %v96_v21, %v175_v14 }
  0xbc   :  { %v176_v31 = vrot.slane %v72_v22, %v175_v14 }
  0xbd   :  { %v219_v42 = vsel %vm177_vm7, %v218_v30, %v214_v38 }
  0xbe   :  { %v99_v36 = vpop.xlane.xlu1 %98  ;;  %v178_v43 = vsel %vm177_vm7, %v176_v31, %v171_v39 }
  0xbf   :  { %v75_v37 = vpop.xlane.xlu0 %74  ;;  %v223_v40 = vrot.slane %v99_v36, %v182_v23 }
  0xc0   :  { %v183_v41 = vrot.slane %v75_v37, %v182_v23 }
  0xc1   :  { %v224_v44 = vsel %vm184_vm8, %v223_v40, %v219_v42 }
  0xc2   :  { %v185_v45 = vsel %vm184_vm8, %v183_v41, %v178_v43 }
  0xc3   :  { %v226_v46 = vsel %vm225_vm9, %v224_v44, %v185_v45 }
  0xc4   :  { %443 = vmatmul.mubr.msk.f32.vlgmr.msra.gmra.mrb[0].mxu0 %vm51_vm0, %v226_v46 }
 0x197   :  { %v295_v49 = vpop.f32.mrb[0].mxu0 }
 0x198   :  { %v296_v50 = vadd.f32 %v409_v48, %v295_v49  ;;  %v444_v51 = vpop.f32.mrb[1].mxu0 }
 0x19a   :  { %v299_v52 = vmax.f32 %v296_v50, 0.0 }
 0x19c   :  { %448 = vmatmul.mubr.msk.f32.vlgmr.msra.gmra.mrb[0].mxu1 %vm308_vm11, %v299_v52 }
 0x26f   :  { %v382_v54 = vpop.f32.mrb[0].mxu1 }
 0x270   :  { %v383_v55 = vadd.f32 %v411_v53, %v382_v54  ;;  %v449_v56 = vpop.f32.mrb[1].mxu1 }
 0x272   :  { %v414_v57 = vmul.f32 -1.442695, %v383_v55 }
 0x274   :  { %469 = vpow2.f32 %v414_v57 }
 0x27e   :  { %v470_v58 = vpop.eup %469 }
 0x27f   :  { %v389_v59 = vadd.f32 1.0, %v470_v58 }
 0x281   :  { %471 = vrcp.f32 %v389_v59 }
 0x28b   :  { %v472_v60 = vpop.eup %471 }
 0x28c   :  { %393 = vst.msk [vmem:[#allocation5] sm:$0x3] %vm392_vm12, %v472_v60 }
 0x28d   :  { %506 = shalt.err (!%p503_p12)
}
 0x28e   :  { %s507_s29 = scalar_lea.hbm %s647_s5, 32 }
 0x28f   :  { %p508_p13 = scmp.ne.s32.totalorder %s647_s5, %s507_s29  ;;  %p511_p0 = scmp.lt.u32.totalorder %s507_s29, %s647_s5 }
 0x291   :  { %p513_p1 = pnand %p511_p0, %p508_p13 }
 0x293   :  { %516 = shalt.err (!%p513_p1)
}
 0x294   :  { %403 = dma.vmem_to_hbm [thread:$0]  %s401_s2, 32, %s647_s5, [#allocation4]  }
 0x295   :  { %519 = dma.done.wait [#allocation4], 32  }
 0x296   :  { %520 = vsyncadd [#allocation4], 4294967264 }
 0x297   :  { %407 = vsyncpa [#allocation3], 1 }
 0x298   :  { %408 = vsyncpa [#allocation4], 1 }

</bundles_post_ra>
